<compile_context>
chip_gen: v7x
topology: tpu7x:2x2x1
jax: 0.10.0
libtpu: 0.0.40
codegen_flags: <defaults>
</compile_context>

<pallas_src>
import functools
import math

import jax
import jax.numpy as jnp
from jax import lax
from jax.experimental import pallas as pl
from jax.experimental.pallas import tpu as pltpu


def _ceil_to(x, m):
    return (x + m - 1) // m * m


def _row_tile(hout, cap, multiple):
    """Largest divisor of `hout` that is <= cap and a multiple of `multiple`."""
    best = multiple
    for t in range(multiple, min(cap, hout) + 1, multiple):
        if hout % t == 0:
            best = t
    return best


def _vmem_limit_bytes(block_shapes):
    """Double-buffered VMEM footprint of the given f32 blocks (+ margin)."""
    total = 0
    for s in block_shapes:
        lead = 1
        for d in s[:-2]:
            lead *= d
        total += lead * _ceil_to(s[-2], 8) * _ceil_to(s[-1], 128) * 4
    return int(min(max(2 * total + (8 << 20), 24 << 20), 48 << 20))


# ------------------------------------------------- fused conv + BN + ReLU (+ pool)
def _conv_bn_relu_pool_kernel(x_ref, w_ref, s_ref, b_ref, *rest,
                              cin, cout, wout, th, ksize, pool, kh_per_dot):
    # x_ref: (1, Hin*Cin, Win)     merged-NHCW image of one batch element
    # w_ref: (KW, Cout, KH*Cin)    conv weights; contraction index = kh*Cin+ci
    # s_ref, b_ref: (Cout, 1)      folded BatchNorm scale / bias
    # sel_ref (pool only): (Wout-4, Wout//5)  one-hot column subsampler
    # o_ref: (1, TH*Cout, Wout)  or  (1, (TH//5)*Cout, Wout//5) when pooled
    if pool:
        sel_ref, o_ref = rest
    else:
        (o_ref,) = rest

    row0 = pl.program_id(1) * th            # first conv-output row of this tile

    def conv_row(h):
        # One conv output row `h`: ReLU(scale * conv + bias), shape (Cout, Wout).
        acc = jnp.zeros((cout, wout), jnp.float32)
        for kh0 in range(0, ksize, kh_per_dot):
            kk = kh_per_dot * cin
            win = x_ref[0, pl.ds((h + kh0) * cin, kk), :]        # (kk, Win)
            for kw in range(ksize):
                acc = acc + jnp.dot(
                    w_ref[kw, :, kh0 * cin:kh0 * cin + kk],      # (Cout, kk)
                    win[:, kw:kw + wout],                        # (kk, Wout)
                    preferred_element_type=jnp.float32)
        return jnp.maximum(acc * s_ref[...] + b_ref[...], 0.0)

    if not pool:
        def body(i, carry):
            val = conv_row(row0 + i)
            o_ref[0, pl.ds(i * cout, cout), :] = val.astype(o_ref.dtype)
            return carry
        lax.fori_loop(0, th, body, 0)
    else:
        p = 5                                # nn.MaxPool2d((5, 5))
        def body(g, carry):
            h0 = row0 + g * p
            rmax = conv_row(h0)
            for k in range(1, p):            # max over the 5 pooled rows
                rmax = jnp.maximum(rmax, conv_row(h0 + k))
            width = wout - p + 1             # sliding 5-wide max along lanes
            slide = rmax[:, :width]
            for k in range(1, p):
                slide = jnp.maximum(slide, rmax[:, k:k + width])
            # take every 5th column via a one-hot matmul (lane-layout safe)
            pooled = jnp.dot(slide, sel_ref[...],
                             preferred_element_type=jnp.float32)
            o_ref[0, pl.ds(g * cout, cout), :] = pooled.astype(o_ref.dtype)
            return carry
        lax.fori_loop(0, th // p, body, 0)


def conv_bn_relu(x, w, scale, bias, *, pool=False, ksize=5, row_cap=80):
    """Fused Conv2d(5x5) + folded BatchNorm + ReLU (+ fused 5x5 MaxPool).

    x: (B, Hin*Cin, Win) merged-NHCW activations; returns the same layout.
    """
    B, hc, win = x.shape
    kw_dim, cout, kcin = w.shape
    assert kw_dim == ksize
    cin = kcin // ksize
    hin = hc // cin
    hout, wout = hin - ksize + 1, win - ksize + 1
    p = 5 if pool else 1
    if pool:
        # exact for this network geometry; nn.MaxPool2d floor-crops otherwise
        assert hout % 5 == 0 and wout % 5 == 0
    th = _row_tile(hout, row_cap, p)
    hp, wp = hout // p, wout // p

    # fold all 5 kh taps into one contraction unless the window gets too large
    kh_per_dot = ksize if ksize * cin * _ceil_to(win, 128) * 4 <= (128 << 10) else 1

    kernel = functools.partial(
        _conv_bn_relu_pool_kernel, cin=cin, cout=cout, wout=wout, th=th,
        ksize=ksize, pool=pool, kh_per_dot=kh_per_dot)

    x_blk = (1, hin * cin, win)
    w_blk = (ksize, cout, ksize * cin)
    sb_blk = (cout, 1)
    out_blk = (1, (th // p) * cout, wp)

    in_specs = [
        pl.BlockSpec(x_blk, lambda b, r: (b, 0, 0)),    # image resident across r
        pl.BlockSpec(w_blk, lambda b, r: (0, 0, 0)),
        pl.BlockSpec(sb_blk, lambda b, r: (0, 0)),
        pl.BlockSpec(sb_blk, lambda b, r: (0, 0)),
    ]
    args = [x, w, scale, bias]
    blocks = [x_blk, w_blk, sb_blk, sb_blk, out_blk]
    if pool:
        sel = (jnp.arange(wout - 4)[:, None] == 5 * jnp.arange(wp)[None, :]
               ).astype(jnp.float32)
        in_specs.append(pl.BlockSpec((wout - 4, wp), lambda b, r: (0, 0)))
        args.append(sel)
        blocks.append((wout - 4, wp))

    return pl.pallas_call(
        kernel,
        out_shape=jax.ShapeDtypeStruct((B, hp * cout, wp), jnp.float32),
        grid=(B, hout // th),
        in_specs=in_specs,
        out_specs=pl.BlockSpec(out_blk, lambda b, r: (b, r, 0)),
        compiler_params=pltpu.CompilerParams(
            # batch and row tiles are fully independent -> both parallel
            dimension_semantics=("parallel", "parallel"),
            vmem_limit_bytes=_vmem_limit_bytes(blocks)),
    )(*args)


# ------------------------------------------------------------------------- linear
def _linear_kernel(x_ref, w_ref, b_ref, o_ref):
    o_ref[...] = (jnp.dot(x_ref[...], w_ref[...],
                          preferred_element_type=jnp.float32)
                  + b_ref[...]).astype(o_ref.dtype)


def linear(x, w, b):
    B, F = x.shape
    N = w.shape[1]                           # padded to 128 lanes by init
    return pl.pallas_call(
        _linear_kernel,
        out_shape=jax.ShapeDtypeStruct((B, N), jnp.float32),
        grid=(1,),
        in_specs=[pl.BlockSpec((B, F), lambda i: (0, 0)),
                  pl.BlockSpec((F, N), lambda i: (0, 0)),
                  pl.BlockSpec((1, N), lambda i: (0, 0))],
        out_specs=pl.BlockSpec((B, N), lambda i: (0, 0)),
    )(x, w, b)


# -------------------------------------------------------------------------- params
def init_params(key, num_classes, eps=1e-5):
    conv_dims = [(3, 6), (6, 16), (16, 32), (32, 64), (64, 128), (128, 256)]
    convs = []
    for cin, cout in conv_dims:
        key, k1, k2, k3, k4, k5, k6 = jax.random.split(key, 7)
        w = jax.random.normal(k1, (cout, cin, 5, 5), jnp.float32) / math.sqrt(cin * 25)
        b = 0.01 * jax.random.normal(k2, (cout,), jnp.float32)
        gamma = 1.0 + 0.1 * jax.random.normal(k3, (cout,), jnp.float32)
        beta = 0.01 * jax.random.normal(k4, (cout,), jnp.float32)
        r_mean = 0.01 * jax.random.normal(k5, (cout,), jnp.float32)
        r_var = 0.5 + jax.random.uniform(k6, (cout,), jnp.float32)
        # fold eval-mode BatchNorm (running stats) + conv bias into scale/bias
        inv = gamma / jnp.sqrt(r_var + eps)
        scale = inv
        bias = beta + (b - r_mean) * inv
        # zero-pad channels to multiples of 8 (padded output channels stay 0)
        cin_p, cout_p = _ceil_to(cin, 8), _ceil_to(cout, 8)
        w = jnp.pad(w, ((0, cout_p - cout), (0, cin_p - cin), (0, 0), (0, 0)))
        scale = jnp.pad(scale, (0, cout_p - cout)).reshape(cout_p, 1)
        bias = jnp.pad(bias, (0, cout_p - cout)).reshape(cout_p, 1)
        # (Cout, Cin, KH, KW) -> (KW, Cout, KH*Cin): contraction index kh*Cin+ci
        # matches a contiguous (row, channel) window of the merged activations.
        w = jnp.transpose(w, (3, 0, 2, 1)).reshape(5, cout_p, 5 * cin_p)
        convs.append((w, scale, bias))
    key, k7, k8 = jax.random.split(key, 3)
    n_pad = _ceil_to(num_classes, 128)       # lane-dense fc output, sliced later
    fw = jax.random.normal(k7, (1024, num_classes), jnp.float32) / math.sqrt(1024.0)
    fb = 0.01 * jax.random.normal(k8, (num_classes,), jnp.float32)
    fw = jnp.pad(fw, ((0, 0), (0, n_pad - num_classes)))        # = fc1.weight.T
    fb = jnp.pad(fb, (0, n_pad - num_classes)).reshape(1, n_pad)
    return convs, (fw, fb)


# ------------------------------------------------------------------------- forward
def cifar10_cnn_forward(x_nchw, params, num_classes):
    convs, (fw, fb) = params
    B, C, H, W = x_nchw.shape
    cin0 = convs[0][0].shape[2] // 5
    # NCHW -> merged NHCW (B, H*C, W), channels zero-padded to a multiple of 8
    x = jnp.transpose(x_nchw, (0, 2, 1, 3))
    x = jnp.pad(x, ((0, 0), (0, 0), (0, cin0 - C), (0, 0)))
    x = x.reshape(B, H * cin0, W)

    pools = (False, True, False, True, False, True)   # pool fused after conv2/4/6
    for (w, s, b), pool in zip(convs, pools):
        x = conv_bn_relu(x, w, s, b, pool=pool)

    # merged (B, Hp*C, Wp) -> torch.flatten(NCHW) feature order (c, h, w)
    cl = convs[-1][0].shape[1]
    hp, wp = x.shape[1] // cl, x.shape[2]
    feats = jnp.transpose(x.reshape(B, hp, cl, wp), (0, 2, 1, 3)).reshape(B, -1)
    assert feats.shape[1] == fw.shape[0]      # fc1 expects 1024 features
    return linear(feats, fw, fb)[:, :num_classes]


if __name__ == "__main__":
    num_classes = 10
    # 498 is the smallest spatial size for which the flattened features equal
    # 1024 = fc1.in_features (the module's shape math implies ~500x500 inputs).
    B, H = 2, 498
    key = jax.random.PRNGKey(0)
    kx, kp = jax.random.split(key)
    x_nchw = jax.random.normal(kx, (B, 3, H, H), jnp.float32)
    params = init_params(kp, num_classes)

    out = cifar10_cnn_forward(x_nchw, params, num_classes)
    jax.block_until_ready(out)
    assert out.shape == (B, num_classes)
    print("KERNEL_OK")
</pallas_src>

<mosaic_0001>
module attributes {stable_mosaic.version = 11 : i64} {
  func.func @_conv_bn_relu_pool_kernel(%arg0: i32, %arg1: i32, %arg2: memref<1x3984x498xf32, #tpu.memory_space<vmem>>, %arg3: memref<5x8x40xf32, #tpu.memory_space<vmem>>, %arg4: memref<8x1xf32, #tpu.memory_space<vmem>>, %arg5: memref<8x1xf32, #tpu.memory_space<vmem>>, %arg6: memref<1x304x494xf32, #tpu.memory_space<vmem>>) attributes {dimension_semantics = [#tpu.dimension_semantics<parallel>, #tpu.dimension_semantics<parallel>], iteration_bounds = array<i64: 2, 13>, scalar_prefetch = 0 : i64, scratch_operands = 0 : i64, tpu.core_type = #tpu.core_type<tc>, window_params = [{transform_indices = @transform_0, window_bounds = array<i64: 1, 3984, 498>}, {pipeline_mode = #tpu.pipeline_mode<synchronous>, transform_indices = @transform_1, window_bounds = array<i64: 5, 8, 40>}, {pipeline_mode = #tpu.pipeline_mode<synchronous>, transform_indices = @transform_2, window_bounds = array<i64: 8, 1>}, {pipeline_mode = #tpu.pipeline_mode<synchronous>, transform_indices = @transform_3, window_bounds = array<i64: 8, 1>}, {transform_indices = @transform_4, window_bounds = array<i64: 1, 304, 494>}]} {
    %c38_i32 = arith.constant 38 : i32
    %0 = arith.muli %arg1, %c38_i32 : i32
    %c0_i32 = arith.constant 0 : i32
    %c38_i32_0 = arith.constant 38 : i32
    %1 = arith.addi %c0_i32, %c38_i32_0 : i32
    %c1_i32 = arith.constant 1 : i32
    scf.for %arg7 = %c0_i32 to %1 step %c1_i32  : i32 {
      %2 = arith.addi %0, %arg7 : i32
      %cst = arith.constant 0.000000e+00 : f32
      %3 = vector.broadcast %cst : f32 to vector<8x494xf32>
      %c0_i32_2 = arith.constant 0 : i32
      %4 = arith.addi %2, %c0_i32_2 : i32
      %c8_i32 = arith.constant 8 : i32
      %5 = arith.muli %4, %c8_i32 : i32
      %c0 = arith.constant 0 : index
      %6 = arith.index_cast %5 : i32 to index
      %c0_3 = arith.constant 0 : index
      %7 = vector.load %arg2[%c0, %6, %c0_3] : memref<1x3984x498xf32, #tpu.memory_space<vmem>>, vector<1x40x498xf32>
      %8 = vector.shape_cast %7 : vector<1x40x498xf32> to vector<40x498xf32>
      %c0_4 = arith.constant 0 : index
      %c0_5 = arith.constant 0 : index
      %c0_6 = arith.constant 0 : index
      %9 = vector.load %arg3[%c0_4, %c0_5, %c0_6] : memref<5x8x40xf32, #tpu.memory_space<vmem>>, vector<1x8x40xf32>
      %10 = vector.shape_cast %9 : vector<1x8x40xf32> to vector<8x40xf32>
      %11 = vector.extract_strided_slice %8 {offsets = [0, 0], sizes = [40, 494], strides = [1, 1]} : vector<40x498xf32> to vector<40x494xf32>
      %cst_7 = arith.constant dense<0.000000e+00> : vector<8x494xf32>
      %12 = tpu.matmul %10, %11, %cst_7 {dimension_numbers = #tpu.dot_dimension_numbers<[1], [0], [0], [1], [0, 0, 1, 1], [], []>} : vector<8x40xf32>, vector<40x494xf32>, vector<8x494xf32> -> vector<8x494xf32>
      %13 = arith.addf %3, %12 : vector<8x494xf32>
      %c1 = arith.constant 1 : index
      %c0_8 = arith.constant 0 : index
      %c0_9 = arith.constant 0 : index
      %14 = vector.load %arg3[%c1, %c0_8, %c0_9] : memref<5x8x40xf32, #tpu.memory_space<vmem>>, vector<1x8x40xf32>
      %15 = vector.shape_cast %14 : vector<1x8x40xf32> to vector<8x40xf32>
      %16 = vector.extract_strided_slice %8 {offsets = [0, 1], sizes = [40, 494], strides = [1, 1]} : vector<40x498xf32> to vector<40x494xf32>
      %cst_10 = arith.constant dense<0.000000e+00> : vector<8x494xf32>
      %17 = tpu.matmul %15, %16, %cst_10 {dimension_numbers = #tpu.dot_dimension_numbers<[1], [0], [0], [1], [0, 0, 1, 1], [], []>} : vector<8x40xf32>, vector<40x494xf32>, vector<8x494xf32> -> vector<8x494xf32>
      %18 = arith.addf %13, %17 : vector<8x494xf32>
      %c2 = arith.constant 2 : index
      %c0_11 = arith.constant 0 : index
      %c0_12 = arith.constant 0 : index
      %19 = vector.load %arg3[%c2, %c0_11, %c0_12] : memref<5x8x40xf32, #tpu.memory_space<vmem>>, vector<1x8x40xf32>
      %20 = vector.shape_cast %19 : vector<1x8x40xf32> to vector<8x40xf32>
      %21 = vector.extract_strided_slice %8 {offsets = [0, 2], sizes = [40, 494], strides = [1, 1]} : vector<40x498xf32> to vector<40x494xf32>
      %cst_13 = arith.constant dense<0.000000e+00> : vector<8x494xf32>
      %22 = tpu.matmul %20, %21, %cst_13 {dimension_numbers = #tpu.dot_dimension_numbers<[1], [0], [0], [1], [0, 0, 1, 1], [], []>} : vector<8x40xf32>, vector<40x494xf32>, vector<8x494xf32> -> vector<8x494xf32>
      %23 = arith.addf %18, %22 : vector<8x494xf32>
      %c3 = arith.constant 3 : index
      %c0_14 = arith.constant 0 : index
      %c0_15 = arith.constant 0 : index
      %24 = vector.load %arg3[%c3, %c0_14, %c0_15] : memref<5x8x40xf32, #tpu.memory_space<vmem>>, vector<1x8x40xf32>
      %25 = vector.shape_cast %24 : vector<1x8x40xf32> to vector<8x40xf32>
      %26 = vector.extract_strided_slice %8 {offsets = [0, 3], sizes = [40, 494], strides = [1, 1]} : vector<40x498xf32> to vector<40x494xf32>
      %cst_16 = arith.constant dense<0.000000e+00> : vector<8x494xf32>
      %27 = tpu.matmul %25, %26, %cst_16 {dimension_numbers = #tpu.dot_dimension_numbers<[1], [0], [0], [1], [0, 0, 1, 1], [], []>} : vector<8x40xf32>, vector<40x494xf32>, vector<8x494xf32> -> vector<8x494xf32>
      %28 = arith.addf %23, %27 : vector<8x494xf32>
      %c4 = arith.constant 4 : index
      %c0_17 = arith.constant 0 : index
      %c0_18 = arith.constant 0 : index
      %29 = vector.load %arg3[%c4, %c0_17, %c0_18] : memref<5x8x40xf32, #tpu.memory_space<vmem>>, vector<1x8x40xf32>
      %30 = vector.shape_cast %29 : vector<1x8x40xf32> to vector<8x40xf32>
      %31 = vector.extract_strided_slice %8 {offsets = [0, 4], sizes = [40, 494], strides = [1, 1]} : vector<40x498xf32> to vector<40x494xf32>
      %cst_19 = arith.constant dense<0.000000e+00> : vector<8x494xf32>
      %32 = tpu.matmul %30, %31, %cst_19 {dimension_numbers = #tpu.dot_dimension_numbers<[1], [0], [0], [1], [0, 0, 1, 1], [], []>} : vector<8x40xf32>, vector<40x494xf32>, vector<8x494xf32> -> vector<8x494xf32>
      %33 = arith.addf %28, %32 : vector<8x494xf32>
      %c0_20 = arith.constant 0 : index
      %c0_21 = arith.constant 0 : index
      %34 = vector.load %arg4[%c0_20, %c0_21] : memref<8x1xf32, #tpu.memory_space<vmem>>, vector<8x1xf32>
      %35 = vector.broadcast %34 : vector<8x1xf32> to vector<8x494xf32>
      %36 = arith.mulf %33, %35 : vector<8x494xf32>
      %c0_22 = arith.constant 0 : index
      %c0_23 = arith.constant 0 : index
      %37 = vector.load %arg5[%c0_22, %c0_23] : memref<8x1xf32, #tpu.memory_space<vmem>>, vector<8x1xf32>
      %38 = vector.broadcast %37 : vector<8x1xf32> to vector<8x494xf32>
      %39 = arith.addf %36, %38 : vector<8x494xf32>
      %cst_24 = arith.constant 0.000000e+00 : f32
      %40 = vector.broadcast %cst_24 : f32 to vector<8x494xf32>
      %41 = arith.maximumf %39, %40 : vector<8x494xf32>
      %c8_i32_25 = arith.constant 8 : i32
      %42 = arith.muli %arg7, %c8_i32_25 : i32
      %c0_26 = arith.constant 0 : index
      %43 = arith.index_cast %42 : i32 to index
      %c0_27 = arith.constant 0 : index
      %44 = vector.load %arg6[%c0_26, %43, %c0_27] : memref<1x304x494xf32, #tpu.memory_space<vmem>>, vector<1x8x494xf32>
      %45 = vector.shape_cast %44 : vector<1x8x494xf32> to vector<8x494xf32>
      %46 = vector.shape_cast %41 : vector<8x494xf32> to vector<1x8x494xf32>
      tpu.vector_store %arg6[%c0_26, %43, %c0_27], %46 {strides = array<i32>} : memref<1x304x494xf32, #tpu.memory_space<vmem>>, vector<1x8x494xf32>,
    }
    %c38_i32_1 = arith.constant 38 : i32
    return
  }
  func.func @transform_0(%arg0: i32, %arg1: i32) -> (i32, i32, i32) {
    %c0_i32 = arith.constant 0 : i32
    %c0_i32_0 = arith.constant 0 : i32
    %c0_i32_1 = arith.constant 0 : i32
    return %arg0, %c0_i32, %c0_i32_0 : i32, i32, i32
  }
  func.func @transform_1(%arg0: i32, %arg1: i32) -> (i32, i32, i32) {
    %c0_i32 = arith.constant 0 : i32
    %c0_i32_0 = arith.constant 0 : i32
    %c0_i32_1 = arith.constant 0 : i32
    %c0_i32_2 = arith.constant 0 : i32
    return %c0_i32, %c0_i32_0, %c0_i32_1 : i32, i32, i32
  }
  func.func @transform_2(%arg0: i32, %arg1: i32) -> (i32, i32) {
    %c0_i32 = arith.constant 0 : i32
    %c0_i32_0 = arith.constant 0 : i32
    %c0_i32_1 = arith.constant 0 : i32
    return %c0_i32, %c0_i32_0 : i32, i32
  }
  func.func @transform_3(%arg0: i32, %arg1: i32) -> (i32, i32) {
    %c0_i32 = arith.constant 0 : i32
    %c0_i32_0 = arith.constant 0 : i32
    %c0_i32_1 = arith.constant 0 : i32
    return %c0_i32, %c0_i32_0 : i32, i32
  }
  func.func @transform_4(%arg0: i32, %arg1: i32) -> (i32, i32, i32) {
    %c0_i32 = arith.constant 0 : i32
    %c0_i32_0 = arith.constant 0 : i32
    return %arg0, %arg1, %c0_i32 : i32, i32, i32
  }
}

</mosaic_0001>

<bundles_post_ra>
// kernel: tpu_custom_call.1
= control target key start
LH: loop header
LB: loop body
LE: loop exit
PB: predicated region body
PF: predicated region fallthrough
CT: control target
= control target key end

     0   :  { %9 = vsyncpa [#allocation3], 0  ;;  %s2553_s0 = inlined_call_operand.hbm [shape: f32[2,3984,498], index: 0, kind: input, shape index: {}]   ;;  %s2554_s1 = inlined_call_operand.hbm [shape: f32[5,8,40], index: 1, kind: input, shape index: {}]   ;;  %s2555_s2 = inlined_call_operand.vmem [shape: f32[8,1], index: 2, kind: input, shape index: {}]   ;;  %s2556_s3 = inlined_call_operand.vmem [shape: f32[8,1], index: 3, kind: input, shape index: {}]   ;;  %s2557_s4 = inlined_call_operand.vmem [shape: f32[2,3952,494], index: 4, kind: output, shape index: {}]  }
   0x1   :  { %11 = vsyncpa [#allocation3 + $0x1], 0 }
   0x2   :  { %12 = vsyncpa [#allocation5], 0  ;;  %s2085_s15 = smov 0   ;;  %s2087_s16 = smov 0  }
   0x3   :  { %s2089_s17 = smov 0   ;;  %s2091_s18 = smov 0  }
   0x4   :  { %s2093_s19 = smov 0   ;;  %s2095_s20 = smov 0  }
   0x5   :  { %s2097_s21 = smov 0   ;;  %s2099_s22 = smov 0  }
   0x6 LB: > { %s1518_s23 = sadd.s32 4294967295, %s2042_s22   ;;  %p50_p0 = scmp.ne.s32.totalorder %s2018_s16, %s2014_s15  ;;  %s2042_s22 = sphi %s2099_s22, %s18_s22   ;;  %s2038_s21 = sphi %s2097_s21, %s2576_s21   ;;  %s2034_s20 = sphi %s2095_s20, %s2575_s20   ;;  %s2030_s19 = sphi %s2093_s19, %s2574_s19   ;;  %s2026_s18 = sphi %s2091_s18, %s2573_s18   ;;  %s2022_s17 = sphi %s2089_s17, %s2572_s17   ;;  %s2018_s16 = sphi %s2087_s16, %s2571_s16   ;;  %s2014_s15 = sphi %s2085_s15, %s2570_s15  }
   0x7   : > { %p2125_p1 = scmp.eq.s32.totalorder %s1518_s23, 0  ;;  %p1520_p2 = scmp.ge.s32.totalorder %s2042_s22, 1 }
   0x8   : > { %p152_p3 = scmp.lt.s32.totalorder %s2042_s22, 27  ;;  %s2048_s27 = smov [#allocation4]  }
   0x9   : > { %s2562_s24 = scalar_select %p2125_p1, 1, 0 }
   0xa   : > { %p2133_p4 = por %p2125_p1, %p50_p0  ;;  %p2137_p5 = pnand %p1520_p2, %p152_p3 }
   0xb   : > { %s164_s28 = sshll.u32 %s2048_s27, 4  ;;  %s1910_s6 = scalar_lea.hbm %s2554_s1, 640  ;;  %s165_s28 = int_to_ptr.vmem [resolvable:$true] %s164_s28 }
   0xc   : > { %s2563_s25 = scalar_select %p2133_p4, 1, 0 }
   0xd   : > { %s2564_s26 = scalar_select %p2137_p5, 1, 0 }
   0xe   : > { %p1654_p6 = pneg %p2137_p5  ;;  %p1911_p8 = scmp.ne.s32.totalorder %s2554_s1, %s1910_s6 }
   0xf   : > { %p1917_p12 = scmp.lt.u32.totalorder %s1910_s6, %s2554_s1 }
  0x10   : > { %p2145_p7 = pnand %p1654_p6, %p2125_p1 }
  0x12   : > { %p1912_p9 = pneg %p2145_p7 }
  0x14   : > { %p1913_p10 = pnand %p1912_p9, %p1911_p8 }
  0x16   : > { %p1914_p11 = pneg %p1913_p10 }
  0x18   : > { %p1919_p13 = pnand %p1917_p12, %p1914_p11 }
  0x1a   : > { %1922 = shalt.err (!%p1919_p13)
}
  0x1b   : > { %s1923_s11 = scalar_lea.vmem %s165_s28, 640  ;;  %p1931_p6 = scmp.lt.s32.totalorder %s165_s28, %s165_s28 }
  0x1c   : > { %p1924_p0 = scmp.ne.s32.totalorder %s165_s28, %s1923_s11  ;;  %p1932_p1 = scmp.lt.s32.totalorder %s1923_s11, %s1923_s11 }
  0x1e   : > { %p1926_p2 = pnand %p1924_p0, %p1912_p9  ;;  %p1933_p4 = por %p1932_p1, %p1931_p6 }
  0x20   : > { %p1927_p3 = pneg %p1926_p2 }
  0x22   : > { %p1934_p5 = pnand %p1933_p4, %p1927_p3 }
  0x24   : > { %1937 = shalt.err (!%p1934_p5)
}
  0x25   : > { %s2049_s12 = smov 128   ;;  %s2050_s13 = smov 8  }
  0x26   : > { %1657 = dma.hbm_to_vmem [thread:$0]  (!%p2145_p7), %s2554_s1, 640, %s165_s28, [#allocation5], %s2049_s12, %s2049_s12, %s2050_s13  }
  0x27   : > { %s27_s23 = sadd.s32 1, %s2034_s20  ;;  %s30_s27 = sadd.s32 1, %s2038_s21 }
  0x28   : > { %p28_p1 = scmp.ge.s32.totalorder %s27_s23, 13  ;;  %s37_s30 = sadd.s32 1, %s2022_s17 }
  0x29   : > { %p44_p4 = scmp.ne.s32.totalorder %s2022_s17, %s2018_s16  ;;  %p45_p5 = scmp.eq.s32.totalorder %s2042_s22, 0 }
  0x2a   : > { %s2578_s23 = smov (%p28_p1, %s27_s23), 0  ;;  %s2580_s27 = smov (!%p28_p1, %s30_s27), %s2038_s21 }
  0x2b   : > { %p1663_p8 = scmp.lt.s32.totalorder %s2042_s22, 26  ;;  %p32_p9 = scmp.ge.s32.totalorder %s2580_s27, 2 }
  0x2c   : > { %s184_s5 = sand.u32 1, %s2022_s17   ;;  %p46_p10 = por %p45_p5, %p44_p4 }
  0x2d   : > { %s2582_s27 = smov (%p32_p9, %s2580_s27), 0  ;;  %s1644_s28 = smul.u32 15936, %s184_s5 }
  0x2e   : > { %p2178_p7 = pnand %p1663_p8, %p46_p10  ;;  %s34_s6 = ssub.s32 %s2038_s21, %s2582_s27 }
  0x2f   : > { %s1645_s7 = smul.u32 254976, %s2038_s21  ;;  %p35_p11 = scmp.eq.s32.totalorder %s34_s6, 0 }
  0x30   : > { %s188_s11 = scalar_lea.vmem [#allocation2], %s1644_s28  ;;  %s2195_s14 = scalar_lea.sflag [#allocation3], %s184_s5 }
  0x31   : > { %s2188_s10 = scalar_lea.hbm %s2553_s0, %s1645_s7  ;;  %s195_s12 = sshll.u32 %s188_s11, 4  ;;  %s2193_s12 = int_to_ptr.vmem [resolvable:$true] %s195_s12 }
  0x32   : > { %s2191_s13 = scalar_select %p35_p11, %s2022_s17, %s37_s30  }
  0x33   : > { %s1938_s15 = scalar_lea.hbm %s2188_s10, 254976  ;;  %p1940_p13 = pneg %p2178_p7 }
  0x34   : > { %p1939_p12 = scmp.ne.s32.totalorder %s2188_s10, %s1938_s15  ;;  %s1943_s8 = scalar_lea.hbm %s2553_s0, 509952 }
  0x35   : > { %p1944_p3 = scmp.lt.u32.totalorder %s2188_s10, %s2553_s0  ;;  %p1945_p6 = scmp.lt.u32.totalorder %s1943_s8, %s1938_s15 }
  0x36   : > { %p1941_p0 = pnand %p1940_p13, %p1939_p12  ;;  %p1947_p4 = scmp.lt.u32.totalorder %s1938_s15, %s2188_s10 }
  0x37   : > { %p1946_p1 = por %p1945_p6, %p1944_p3 }
  0x38   : > { %p1942_p2 = pneg %p1941_p0 }
  0x39   : > { %p1948_p5 = por %p1947_p4, %p1946_p1 }
  0x3b   : > { %p1949_p8 = pnand %p1948_p5, %p1942_p2 }
  0x3d   : > { %1952 = shalt.err (!%p1949_p8)
}
  0x3e   : > { %s1953_s30 = scalar_lea.vmem %s2193_s12, 254976  ;;  %s2051_s5 = smov [#allocation2]  }
  0x3f   : > { %p1954_p9 = scmp.ne.s32.totalorder %s2193_s12, %s1953_s30  ;;  %s1958_s11 = sshll.u32 %s2051_s5, 4  ;;  %s1959_s11 = int_to_ptr.vmem [resolvable:$false] %s1958_s11 }
  0x40   : > { %s1960_s6 = scalar_lea.vmem %s1959_s11, 509952  ;;  %p1961_p12 = scmp.lt.s32.totalorder %s2193_s12, %s1959_s11 }
  0x41   : > { %p1956_p10 = pnand %p1954_p9, %p1940_p13  ;;  %p1962_p0 = scmp.lt.s32.totalorder %s1960_s6, %s1953_s30 }
  0x43   : > { %p1957_p11 = pneg %p1956_p10  ;;  %p1963_p3 = por %p1962_p0, %p1961_p12 }
  0x45   : > { %p1964_p6 = pnand %p1963_p3, %p1957_p11 }
  0x47   : > { %1967 = shalt.err (!%p1964_p6)
}
  0x48   : > { %s2052_s15 = smov 512   ;;  %s2053_s7 = smov 32  }
  0x49   : > { %1661 = dma.hbm_to_vmem [thread:$0]  (!%p2178_p7), %s2188_s10, 254976, %s2193_s12, %s2195_s14, %s2052_s15, %s2052_s15, %s2053_s7  }
  0x4a   : > { %p2567_p13 = scmp.ne.s32.totalorder %s2564_s26, 0 }
  0x4b   : > { %s209_s8 = sand.u32 (!%p2567_p13), 1, %s2018_s16   ;;  %p2568_p2 = scmp.ne.s32.totalorder (!%p2567_p13), %s2563_s25, 0 }
  0x4c   : > { %207 = sbr.rel (%p2567_p13) target bundleno = 535 (0x217), region = 36  ;;  %s210_s9 = scalar_lea.sflag (!%p2567_p13), [#allocation3], %s209_s8 }
  0x4d   : > { %s2226_s28 = smul.u32 (!%p2567_p13), 15936, %s209_s8 }
  0x4f   : > { %s213_s30 = scalar_lea.vmem (!%p2567_p13), [#allocation2], %s2226_s28 }
  0x53   : > { %2005 = dma.done.wait (%p2568_p2), %s210_s9, 254976  }
  0x54   : > { %2007 = vsyncadd (%p2568_p2), %s210_s9, 4294712320  ;;  %p2569_p1 = scmp.ne.s32.totalorder %s2562_s24, 0 }
  0x56   : > { %2009 = dma.done.wait (%p2569_p1), [#allocation5], 640  }
  0x57   : > { %2011 = vsyncadd (%p2569_p1), [#allocation5], 4294966656  ;;  %s2238_s26 = smul.u32 38, %s2026_s18  ;;  %p248_p7 = scmp.lt.s32.totalorder %s2030_s19, 1 }
  0x58   : > { %s2249_s6 = smov 0  }
  0x59   : > { %s2584_s19 = smov (!%p248_p7, %s2030_s19), 1  ;;  %p250_p4 = scmp.lt.s32.totalorder %s2238_s26, 493 }
  0x5a   : > { %s1647_s29 = smul.u32 1976, %s2584_s19 }
  0x5b   : > { %s251_s10 = scalar_select %p250_p4, %s2238_s26, 493 }
  0x5d   : > { %s1526_s25 = sshll.u32 %s251_s10, 2 }
  0x5e   : > { %s254_s12 = sadd.s32 %s1647_s29, %s1526_s25 }
  0x5f   : > { %s1527_s14 = sshll.u32 %s254_s12, 3 }
  0x60   : > { %s2247_s24 = scalar_lea.vmem %s2557_s4, %s1527_s14 }
  0x61 LB: >> { %s265_s18 = sadd.s32 %s2046_s6, %s2238_s26  ;;  %s2054_s9 = smov 127   ;;  %v2055_v27 = vmov 0.0   ;;  %v2059_v37 = vmov 0   ;;  %v1363_v38 = vld [vmem:[%s2555_s2] sm:$0xff]  ;;  %vm355_vm0 = vcmask 1039360   ;;  %vm391_vm1 = vcmask 326656   ;;  %s2046_s6 = sphi %s2249_s6, %s264_s6  }
  0x62   : >> { %s1528_s19 = sshll.u32 %s265_s18, 3  ;;  %459 = vmatprep.mubr.f32.mxu0 %v2055_v27  ;;  %530 = vmatprep.mubr.f32.mxu1 %v2055_v27  ;;  %s2056_s29 = smov 126   ;;  %v1373_v39 = vld [vmem:[%s2556_s3] sm:$0xff]  ;;  %vm724_vm2 = vcmask 1031168   ;;  %vm951_vm3 = vcmask 1022976   ;;  %vm1178_vm4 = vcmask 1014784  }
  0x63   : >> { %s267_s15 = sshra.s32 %s1528_s19, 3  ;;  %s2057_s10 = smov 125   ;;  %1908 = vset.pattern.permute.xlu0 %v2059_v37  ;;  %1909 = vset.pattern.permute.xlu1 %v2059_v37  ;;  %vm1396_vm5 = vcmask 900096  }
  0x64   : >> { %s1546_s7 = sshll.u32 %s267_s15, 5  ;;  %s2058_s25 = smov 124  }
  0x65   : >> { %s2258_s8 = scalar_lea.vmem %s213_s30, %s1546_s7 [#allocation2]  ;;  %s1541_s18 = sshll.u32 %s2046_s6, 3 }
  0x66   : >> { %v2261_v0 = vld [vmem:[%s2258_s8 + $0x8] sm:$0xff]  ;;  %v2264_v1 = vld [vmem:[%s2258_s8 + $0x10] sm:$0xff]  ;;  %v2267_v2 = vld [vmem:[%s2258_s8] sm:$0xff]  ;;  %s1388_s19 = sshra.s32 %s1541_s18, 3  ;;  %s264_s6 = sadd.s32 1, %s2046_s6  }
  0x67   : >> { %v2271_v3 = vpack.i.bf16 %v2264_v1, %v2261_v0  ;;  %v2274_v4 = vld [vmem:[%s2258_s8 + $0x18] sm:$0xff]  ;;  %v2277_v5 = vld [vmem:[%s2258_s8 + $0x28] sm:$0xff]  ;;  %v2280_v6 = vld [vmem:[%s2258_s8 + $0x30] sm:$0xff]  ;;  %s1547_s15 = sshll.u32 %s1388_s19, 5  ;;  %p261_p5 = scmp.ge.s32.totalorder %s264_s6, 38  }
  0x68   : >> { %v2284_v7 = vpack.i.bf16 %v2274_v4, %v2267_v2  ;;  %v2287_v8 = vld [vmem:[%s2258_s8 + $0x20] sm:$0xff]  ;;  %v2290_v9 = vld [vmem:[%s2258_s8 + $0x38] sm:$0xff]  ;;  %v2296_v10 = vpack.i.bf16 %v2280_v6, %v2277_v5  ;;  %v2299_v11 = vld [vmem:[%s2258_s8 + $0x48] sm:$0xff]  ;;  %v1564_v24 = vpack.c.bf16 %v2277_v5, %v2261_v0  ;;  %v1574_v28 = vpack.c.bf16 %v2280_v6, %v2264_v1  ;;  %s1392_s7 = scalar_lea.vmem %s2247_s24, %s1547_s15 }
  0x69   : >> { %1749 = vrot.lane.b32.xlu0 %v2271_v3, %s2054_s9  ;;  %v2302_v12 = vld [vmem:[%s2258_s8 + $0x50] sm:$0xff]  ;;  %v2308_v13 = vpack.i.bf16 %v2290_v9, %v2287_v8  ;;  %v2311_v14 = vld [vmem:[%s2258_s8 + $0x68] sm:$0xff]  ;;  %v2321_v17 = vld [vmem:[%s2258_s8 + $0x40] sm:$0xff]  ;;  %v1572_v25 = vpack.c.bf16 %v2290_v9, %v2274_v4  ;;  %v1566_v26 = vpack.c.bf16 %v2287_v8, %v2267_v2 }
  0x6a   : >> { %1759 = vrot.lane.b32.xlu1 %v2284_v7, %s2054_s9  ;;  %v2314_v15 = vld [vmem:[%s2258_s8 + $0x70] sm:$0xff]  ;;  %v2318_v16 = vpack.i.bf16 %v2302_v12, %v2299_v11  ;;  %v2328_v19 = vld [vmem:[%s2258_s8 + $0x58] sm:$0xff]  ;;  %v2331_v20 = vld [vmem:[%s2258_s8 + $0x60] sm:$0xff]  ;;  %v1568_v29 = vpack.c.bf16 %v2311_v14, %v2299_v11 }
  0x6b   : >> { %v1773_v18 = vpack.i.bf16 %v2314_v15, %v2311_v14  ;;  %v2334_v21 = vld [vmem:[%s2258_s8 + $0x78] sm:$0xff]  ;;  %v1898_v22 = vpack.i.bf16 %v2328_v19, %v2321_v17  ;;  %v2360_v30 = vld [vmem:[%s2258_s8 + $0x88] sm:$0xff]  ;;  %v2365_v32 = vld [vmem:[%s2258_s8 + $0x90] sm:$0xff]  ;;  %v1570_v33 = vpack.c.bf16 %v2331_v20, %v2321_v17  ;;  %v1578_v34 = vpack.c.bf16 %v2314_v15, %v2302_v12 }
  0x6c   : >> { %v1903_v23 = vpack.i.bf16 %v2334_v21, %v2331_v20  ;;  %v1576_v31 = vpack.c.bf16 %v2334_v21, %v2328_v19  ;;  %v2376_v35 = vld [vmem:[%s2258_s8 + $0x80] sm:$0xff]  ;;  %v2379_v36 = vld [vmem:[%s2258_s8 + $0x98] sm:$0xff] }
  0x6d   : >> { %1754 = vrot.lane.b32.xlu0 %v2296_v10, %s2054_s9 }
  0x6e   : >> { %1764 = vrot.lane.b32.xlu1 %v2308_v13, %s2054_s9 }
  0x71   : >> { %1769 = vrot.lane.b32.xlu0 %v2318_v16, %s2054_s9 }
  0x72   : >> { %1774 = vrot.lane.b32.xlu1 %v1773_v18, %s2054_s9 }
  0x75   : >> { %1779 = vrot.lane.b32.xlu0 %v1898_v22, %s2054_s9 }
  0x76   : >> { %1784 = vrot.lane.b32.xlu1 %v1903_v23, %s2054_s9 }
  0x79   : >> { %349 = vrot.lane.b32.xlu0 %v2360_v30, %s2054_s9 }
  0x7a   : >> { %351 = vrot.lane.b32.xlu1 %v2365_v32, %s2054_s9 }
  0x7d   : >> { %347 = vrot.lane.b32.xlu0 %v2376_v35, %s2054_s9 }
  0x7e   : >> { %353 = vrot.lane.b32.xlu1 %v2379_v36, %s2054_s9 }
  0x81   : >> { %1789 = vrot.lane.b32.xlu0 %v2271_v3, %s2056_s29 }
  0x82   : >> { %1794 = vrot.lane.b32.xlu1 %v2296_v10, %s2056_s29 }
  0x85   : >> { %1799 = vrot.lane.b32.xlu0 %v2284_v7, %s2056_s29 }
  0x86   : >> { %1804 = vrot.lane.b32.xlu1 %v2308_v13, %s2056_s29 }
  0x89   : >> { %1809 = vrot.lane.b32.xlu0 %v2318_v16, %s2056_s29 }
  0x8a   : >> { %1814 = vrot.lane.b32.xlu1 %v1773_v18, %s2056_s29 }
  0x8d   : >> { %1819 = vrot.lane.b32.xlu0 %v1898_v22, %s2056_s29 }
  0x8e   : >> { %1824 = vrot.lane.b32.xlu1 %v1903_v23, %s2056_s29 }
  0x91   : >> { %718 = vrot.lane.b32.xlu0 %v2360_v30, %s2056_s29 }
  0x92   : >> { %720 = vrot.lane.b32.xlu1 %v2365_v32, %s2056_s29 }
  0x95   : >> { %1829 = vrot.lane.b32.xlu0 %v2271_v3, %s2057_s10 }
  0x96   : >> { %1834 = vrot.lane.b32.xlu1 %v2296_v10, %s2057_s10 }
  0x99   : >> { %716 = vrot.lane.b32.xlu0 %v2376_v35, %s2056_s29 }
  0x9a   : >> { %722 = vrot.lane.b32.xlu1 %v2379_v36, %s2056_s29 }
  0x9d   : >> { %1839 = vrot.lane.b32.xlu0 %v2284_v7, %s2057_s10 }
  0x9e   : >> { %1844 = vrot.lane.b32.xlu1 %v2308_v13, %s2057_s10 }
  0xa1   : >> { %1849 = vrot.lane.b32.xlu0 %v2318_v16, %s2057_s10 }
  0xa2   : >> { %1854 = vrot.lane.b32.xlu1 %v1773_v18, %s2057_s10 }
  0xa5   : >> { %1859 = vrot.lane.b32.xlu0 %v1898_v22, %s2057_s10 }
  0xa6   : >> { %1864 = vrot.lane.b32.xlu1 %v1903_v23, %s2057_s10 }
  0xa9   : >> { %945 = vrot.lane.b32.xlu0 %v2360_v30, %s2057_s10 }
  0xaa   : >> { %947 = vrot.lane.b32.xlu1 %v2365_v32, %s2057_s10 }
  0xad   : >> { %1869 = vrot.lane.b32.xlu0 %v2271_v3, %s2058_s25 }
  0xae   : >> { %1874 = vrot.lane.b32.xlu1 %v2296_v10, %s2058_s25 }
  0xb1   : >> { %943 = vrot.lane.b32.xlu0 %v2376_v35, %s2057_s10 }
  0xb2   : >> { %949 = vrot.lane.b32.xlu1 %v2379_v36, %s2057_s10 }
  0xb5   : >> { %1879 = vrot.lane.b32.xlu0 %v2284_v7, %s2058_s25 }
  0xb6   : >> { %1884 = vrot.lane.b32.xlu1 %v2308_v13, %s2058_s25 }
  0xb9   : >> { %1889 = vrot.lane.b32.xlu0 %v2318_v16, %s2058_s25 }
  0xba   : >> { %1894 = vrot.lane.b32.xlu1 %v1773_v18, %s2058_s25 }
  0xbd   : >> { %1899 = vrot.lane.b32.xlu0 %v1898_v22, %s2058_s25 }
  0xbe   : >> { %1904 = vrot.lane.b32.xlu1 %v1903_v23, %s2058_s25 }
  0xc1   : >> { %1172 = vrot.lane.b32.xlu0 %v2360_v30, %s2058_s25 }
  0xc2   : >> { %1174 = vrot.lane.b32.xlu1 %v2365_v32, %s2058_s25 }
  0xc5   : >> { %1170 = vrot.lane.b32.xlu0 %v2376_v35, %s2058_s25 }
  0xc6   : >> { %1176 = vrot.lane.b32.xlu1 %v2379_v36, %s2058_s25 }
  0xc9   : >> { %1366 = vperm.xlu0 %1908, %v1363_v38  }
  0xca   : >> { %1376 = vperm.xlu1 %1909, %v1373_v39  }
  0xdb   : >> { %v1750_v40 = vpop.permute.xlu0 %1749 }
  0xdc   : >> { %v1760_v41 = vpop.permute.xlu1 %1759  ;;  %v1752_v42 = vunpack.i.h.bf16 %v1750_v40  ;;  %v1751_v43 = vunpack.i.l.bf16 %v1750_v40 }
  0xdd   : >> { %v1762_v44 = vunpack.i.h.bf16 %v1760_v41  ;;  %v1761_v45 = vunpack.i.l.bf16 %v1760_v41 }
  0xde   : >> { %v357_v52 = vsel %vm355_vm0, %v1751_v43, %v1752_v42 }
  0xdf   : >> { %v1755_v46 = vpop.permute.xlu0 %1754  ;;  %v358_v54 = vsel %vm355_vm0, %v1752_v42, %v1762_v44  ;;  %v356_v55 = vsel %vm355_vm0, %v1761_v45, %v1751_v43 }
  0xe0   : >> { %v1757_v47 = vunpack.i.h.bf16 %v1755_v46  ;;  %v1756_v48 = vunpack.i.l.bf16 %v1755_v46  ;;  %v1765_v49 = vpop.permute.xlu1 %1764 }
  0xe1   : >> { %v1767_v50 = vunpack.i.h.bf16 %v1765_v49  ;;  %v1766_v51 = vunpack.i.l.bf16 %v1765_v49 }
  0xe2   : >> { %v360_v53 = vsel %vm355_vm0, %v1756_v48, %v1757_v47 }
  0xe3   : >> { %v1770_v56 = vpop.permute.xlu0 %1769  ;;  %v1556_v57 = vpack.c.bf16 %v1767_v50, %v1762_v44  ;;  %v1548_v58 = vpack.c.bf16 %v360_v53, %v357_v52  ;;  %v361_v59 = vsel %vm355_vm0, %v1757_v47, %v1767_v50  ;;  %v359_v60 = vsel %vm355_vm0, %v1766_v51, %v1756_v48 }
  0xe4   : >> { %v1772_v61 = vunpack.i.h.bf16 %v1770_v56  ;;  %v1771_v62 = vunpack.i.l.bf16 %v1770_v56  ;;  %v1775_v63 = vpop.permute.xlu1 %1774  ;;  %v1558_v3 = vpack.c.bf16 %v361_v59, %v358_v54  ;;  %v1550_v7 = vpack.c.bf16 %v359_v60, %v356_v55  ;;  %v294_v56 = vld [vmem:[#allocation4 + $0x8] sm:$0xff] }
  0xe5   : >> { %v1777_v10 = vunpack.i.h.bf16 %v1775_v63  ;;  %v1776_v13 = vunpack.i.l.bf16 %v1775_v63  ;;  %1557 = vmatprep.subr.bf16.mxu1 %v1556_v57  ;;  %1549 = vmatprep.subr.bf16.mxu0 %v1548_v58 }
  0xe6   : >> { %1559 = vmatpush1.bf16.msra.mxu1 %v1558_v3  ;;  %1551 = vmatpush1.bf16.msra.mxu0 %v1550_v7  ;;  %v363_v16 = vsel %vm355_vm0, %v1771_v62, %v1772_v61 }
  0xe7   : >> { %v1780_v18 = vpop.permute.xlu0 %1779  ;;  %v366_v22 = vsel %vm355_vm0, %v1776_v13, %v1777_v10 }
  0xe8   : >> { %v1782_v23 = vunpack.i.h.bf16 %v1780_v18  ;;  %v1781_v37 = vunpack.i.l.bf16 %v1780_v18  ;;  %v1785_v38 = vpop.permute.xlu1 %1784  ;;  %v1552_v39 = vpack.c.bf16 %v366_v22, %v363_v16 }
  0xe9   : >> { %v1787_v40 = vunpack.i.h.bf16 %v1785_v38  ;;  %v1786_v41 = vunpack.i.l.bf16 %v1785_v38 }
  0xea   : >> { %1553 = vmatprep.subr.bf16.mxu0 %v1552_v39  ;;  %v362_v42 = vsel %vm355_vm0, %v1781_v37, %v1771_v62  ;;  %v364_v43 = vsel %vm355_vm0, %v1772_v61, %v1782_v23 }
  0xeb   : >> { %v1560_v44 = vpack.c.bf16 %v1787_v40, %v1782_v23  ;;  %v350_v45 = vpop.permute.xlu0 %349  ;;  %v365_v46 = vsel %vm355_vm0, %v1786_v41, %v1776_v13  ;;  %v367_v47 = vsel %vm355_vm0, %v1777_v10, %v1787_v40 }
  0xec   : >> { %v352_v48 = vpop.permute.xlu1 %351  ;;  %v1554_v49 = vpack.c.bf16 %v365_v46, %v362_v42  ;;  %v1562_v50 = vpack.c.bf16 %v367_v47, %v364_v43 }
  0xed   : >> { %1561 = vmatprep.subr.bf16.mxu1 %v1560_v44  ;;  %v369_v51 = vsel %vm355_vm0, %v350_v45, %v352_v48 }
  0xee   : >> { %1555 = vmatpush1.bf16.msra.mxu0 %v1554_v49  ;;  %1563 = vmatpush1.bf16.msra.mxu1 %v1562_v50 }
  0xef   : >> { %403 = vmatprep.subr.mxu0 %v369_v51  ;;  %v348_v52 = vpop.permute.xlu0 %347 }
  0xf0   : >> { %v354_v53 = vpop.permute.xlu1 %353  ;;  %v368_v54 = vsel %vm355_vm0, %v348_v52, %v350_v45 }
  0xf1   : >> { %474 = vmatprep.subr.mxu1 %v354_v53  ;;  %v370_v55 = vsel %vm355_vm0, %v352_v48, %v354_v53 }
  0xf2   : >> { %404 = vmatpush1.msra.mxu0 %v368_v54  ;;  %475 = vmatpush1.msra.mxu1 %v370_v55  ;;  %v683_v54 = vld [vmem:[#allocation4 + $0x10] sm:$0xff] }
  0xf3   : >> { %1565 = vmatprep.subr.bf16.mxu0 %v1564_v24  ;;  %1573 = vmatprep.subr.bf16.mxu1 %v1572_v25  ;;  %v1790_v57 = vpop.permute.xlu0 %1789 }
  0xf4   : >> { %v1792_v58 = vunpack.i.h.bf16 %v1790_v57  ;;  %v1791_v59 = vunpack.i.l.bf16 %v1790_v57  ;;  %v1795_v60 = vpop.permute.xlu1 %1794  ;;  %1531 = vmatmul.mubr.msk.f32.vlgmr.msra.gmra.mrb[0].mxu0 %vm391_vm1, %v294_v56  ;;  %1532 = vmatmul.mubr.msk.f32.vlgmr.msra.gmra.mrb[0].mxu1 %vm391_vm1, %v294_v56 }
  0xf5   : >> { %v1797_v61 = vunpack.i.h.bf16 %v1795_v60  ;;  %v1796_v62 = vunpack.i.l.bf16 %v1795_v60  ;;  %1567 = vmatpush1.bf16.msra.mxu0 %v1566_v26  ;;  %1575 = vmatpush1.bf16.msra.mxu1 %v1574_v28 }
  0xf6   : >> { %1569 = vmatprep.subr.bf16.mxu0 %v1568_v29  ;;  %1577 = vmatprep.subr.bf16.mxu1 %v1576_v31  ;;  %v726_v1 = vsel %vm724_vm2, %v1791_v59, %v1792_v58  ;;  %v292_v29 = vld [vmem:[#allocation4] sm:$0xff] }
  0xf7   : >> { %v1800_v0 = vpop.permute.xlu0 %1799  ;;  %604 = vmatprep.mubr.f32.mxu0 %v2055_v27  ;;  %675 = vmatprep.mubr.f32.mxu1 %v2055_v27  ;;  %v729_v6 = vsel %vm724_vm2, %v1796_v62, %v1797_v61 }
  0xf8   : >> { %v1802_v2 = vunpack.i.h.bf16 %v1800_v0  ;;  %v1801_v4 = vunpack.i.l.bf16 %v1800_v0  ;;  %v1805_v5 = vpop.permute.xlu1 %1804  ;;  %v1580_v17 = vpack.c.bf16 %v729_v6, %v726_v1 }
  0xf9   : >> { %v1807_v8 = vunpack.i.h.bf16 %v1805_v5  ;;  %v1806_v9 = vunpack.i.l.bf16 %v1805_v5  ;;  %1571 = vmatpush1.bf16.msra.mxu0 %v1570_v33  ;;  %1579 = vmatpush1.bf16.msra.mxu1 %v1578_v34 }
  0xfa   : >> { %v727_v11 = vsel %vm724_vm2, %v1792_v58, %v1802_v2  ;;  %v725_v14 = vsel %vm724_vm2, %v1801_v4, %v1791_v59  ;;  %548 = vmatprep.subr.mxu0 %v2360_v30  ;;  %619 = vmatprep.subr.mxu1 %v2379_v36 }
  0xfb   : >> { %v1588_v19 = vpack.c.bf16 %v1807_v8, %v1802_v2  ;;  %v728_v21 = vsel %vm724_vm2, %v1806_v9, %v1796_v62  ;;  %v730_v24 = vsel %vm724_vm2, %v1797_v61, %v1807_v8  ;;  %v1810_v25 = vpop.permute.xlu0 %1809 }
  0xfc   : >> { %v1582_v20 = vpack.c.bf16 %v728_v21, %v725_v14  ;;  %v1590_v26 = vpack.c.bf16 %v730_v24, %v727_v11  ;;  %v1812_v28 = vunpack.i.h.bf16 %v1810_v25  ;;  %v1811_v12 = vunpack.i.l.bf16 %v1810_v25  ;;  %v1815_v15 = vpop.permute.xlu1 %1814 }
  0xfd   : >> { %v1817_v31 = vunpack.i.h.bf16 %v1815_v15  ;;  %v1816_v33 = vunpack.i.l.bf16 %v1815_v15  ;;  %549 = vmatpush1.msra.mxu0 %v2376_v35  ;;  %620 = vmatpush1.msra.mxu1 %v2365_v32 }
  0xfe   : >> { %1581 = vmatprep.subr.bf16.mxu0 %v1580_v17  ;;  %1589 = vmatprep.subr.bf16.mxu1 %v1588_v19  ;;  %v732_v30 = vsel %vm724_vm2, %v1811_v12, %v1812_v28 }
  0xff   : >> { %1533 = vmatmul.mubr.msk.f32.vlgmr.msra.gmra.mrb[0].mxu0 %vm391_vm1, %v292_v29  ;;  %1534 = vmatmul.mubr.msk.f32.vlgmr.msra.gmra.mrb[0].mxu1 %vm391_vm1, %v292_v29  ;;  %v1820_v34 = vpop.permute.xlu0 %1819  ;;  %v735_v36 = vsel %vm724_vm2, %v1816_v33, %v1817_v31 }
 0x100   : >> { %1583 = vmatpush1.bf16.msra.mxu0 %v1582_v20  ;;  %1591 = vmatpush1.bf16.msra.mxu1 %v1590_v26  ;;  %v1822_v63 = vunpack.i.h.bf16 %v1820_v34  ;;  %v1821_v3 = vunpack.i.l.bf16 %v1820_v34  ;;  %v1825_v7 = vpop.permute.xlu1 %1824  ;;  %v1584_v10 = vpack.c.bf16 %v735_v36, %v732_v30 }
 0x101   : >> { %v1827_v35 = vunpack.i.h.bf16 %v1825_v7  ;;  %v1826_v13 = vunpack.i.l.bf16 %v1825_v7  ;;  %827 = vmatprep.mubr.f32.mxu0 %v2055_v27  ;;  %898 = vmatprep.mubr.f32.mxu1 %v2055_v27 }
 0x102   : >> { %v731_v32 = vsel %vm724_vm2, %v1821_v3, %v1811_v12  ;;  %v733_v16 = vsel %vm724_vm2, %v1812_v28, %v1822_v63  ;;  %1585 = vmatprep.subr.bf16.mxu0 %v1584_v10 }
 0x103   : >> { %v1592_v18 = vpack.c.bf16 %v1827_v35, %v1822_v63  ;;  %v734_v22 = vsel %vm724_vm2, %v1826_v13, %v1816_v33  ;;  %v736_v23 = vsel %vm724_vm2, %v1817_v31, %v1827_v35  ;;  %v719_v37 = vpop.permute.xlu0 %718 }
 0x104   : >> { %v1586_v38 = vpack.c.bf16 %v734_v22, %v731_v32  ;;  %v1594_v39 = vpack.c.bf16 %v736_v23, %v733_v16  ;;  %v721_v40 = vpop.permute.xlu1 %720 }
 0x105   : >> { %1593 = vmatprep.subr.bf16.mxu1 %v1592_v18  ;;  %v738_v41 = vsel %vm724_vm2, %v719_v37, %v721_v40 }
 0x106   : >> { %1587 = vmatpush1.bf16.msra.mxu0 %v1586_v38  ;;  %1595 = vmatpush1.bf16.msra.mxu1 %v1594_v39 }
 0x107   : >> { %771 = vmatprep.subr.mxu0 %v738_v41  ;;  %v1830_v42 = vpop.permute.xlu0 %1829 }
 0x108   : >> { %v1832_v43 = vunpack.i.h.bf16 %v1830_v42  ;;  %v1831_v44 = vunpack.i.l.bf16 %v1830_v42  ;;  %v1835_v45 = vpop.permute.xlu1 %1834 }
 0x109   : >> { %v1837_v46 = vunpack.i.h.bf16 %v1835_v45  ;;  %v1836_v47 = vunpack.i.l.bf16 %v1835_v45 }
 0x10a   : >> { %v953_v48 = vsel %vm951_vm3, %v1831_v44, %v1832_v43 }
 0x10b   : >> { %v717_v49 = vpop.permute.xlu0 %716  ;;  %v956_v50 = vsel %vm951_vm3, %v1836_v47, %v1837_v46 }
 0x10c   : >> { %v737_v51 = vsel %vm724_vm2, %v717_v49, %v719_v37  ;;  %v723_v52 = vpop.permute.xlu1 %722  ;;  %v1596_v53 = vpack.c.bf16 %v956_v50, %v953_v48 }
 0x10d   : >> { %v739_v55 = vsel %vm724_vm2, %v721_v40, %v723_v52  ;;  %842 = vmatprep.subr.mxu1 %v723_v52  ;;  %772 = vmatpush1.msra.mxu0 %v737_v51 }
 0x10e   : >> { %843 = vmatpush1.msra.mxu1 %v739_v55  ;;  %1597 = vmatprep.subr.bf16.mxu0 %v1596_v53 }
 0x10f   : >> { %v1840_v56 = vpop.permute.xlu0 %1839  ;;  %1535 = vmatmul.mubr.msk.f32.vlgmr.msra.gmra.mrb[0].mxu0 %vm391_vm1, %v683_v54  ;;  %1536 = vmatmul.mubr.msk.f32.vlgmr.msra.gmra.mrb[0].mxu1 %vm391_vm1, %v683_v54 }
 0x110   : >> { %v1842_v57 = vunpack.i.h.bf16 %v1840_v56  ;;  %v1841_v58 = vunpack.i.l.bf16 %v1840_v56  ;;  %v1845_v59 = vpop.permute.xlu1 %1844  ;;  %1054 = vmatprep.mubr.f32.mxu0 %v2055_v27  ;;  %1125 = vmatprep.mubr.f32.mxu1 %v2055_v27 }
 0x111   : >> { %v1847_v60 = vunpack.i.h.bf16 %v1845_v59  ;;  %v1846_v61 = vunpack.i.l.bf16 %v1845_v59 }
 0x112   : >> { %v952_v62 = vsel %vm951_vm3, %v1841_v58, %v1831_v44  ;;  %v954_v0 = vsel %vm951_vm3, %v1832_v43, %v1842_v57  ;;  %v910_v43 = vld [vmem:[#allocation4 + $0x18] sm:$0xff] }
 0x113   : >> { %v1604_v2 = vpack.c.bf16 %v1847_v60, %v1842_v57  ;;  %v955_v4 = vsel %vm951_vm3, %v1846_v61, %v1836_v47  ;;  %v957_v5 = vsel %vm951_vm3, %v1837_v46, %v1847_v60  ;;  %v1850_v1 = vpop.permute.xlu0 %1849 }
 0x114   : >> { %v1598_v6 = vpack.c.bf16 %v955_v4, %v952_v62  ;;  %v1606_v8 = vpack.c.bf16 %v957_v5, %v954_v0  ;;  %v1852_v9 = vunpack.i.h.bf16 %v1850_v1  ;;  %v1851_v11 = vunpack.i.l.bf16 %v1850_v1  ;;  %v1855_v14 = vpop.permute.xlu1 %1854 }
 0x115   : >> { %v1857_v19 = vunpack.i.h.bf16 %v1855_v14  ;;  %v1856_v21 = vunpack.i.l.bf16 %v1855_v14  ;;  %1605 = vmatprep.subr.bf16.mxu1 %v1604_v2 }
 0x116   : >> { %1599 = vmatpush1.bf16.msra.mxu0 %v1598_v6  ;;  %1607 = vmatpush1.bf16.msra.mxu1 %v1606_v8  ;;  %v959_v24 = vsel %vm951_vm3, %v1851_v11, %v1852_v9 }
 0x117   : >> { %v1860_v25 = vpop.permute.xlu0 %1859  ;;  %v962_v17 = vsel %vm951_vm3, %v1856_v21, %v1857_v19 }
 0x118   : >> { %v1862_v20 = vunpack.i.h.bf16 %v1860_v25  ;;  %v1861_v26 = vunpack.i.l.bf16 %v1860_v25  ;;  %v1865_v28 = vpop.permute.xlu1 %1864  ;;  %v1600_v12 = vpack.c.bf16 %v962_v17, %v959_v24 }
 0x119   : >> { %v1867_v15 = vunpack.i.h.bf16 %v1865_v28  ;;  %v1866_v29 = vunpack.i.l.bf16 %v1865_v28 }
 0x11a   : >> { %v958_v31 = vsel %vm951_vm3, %v1861_v26, %v1851_v11  ;;  %v960_v33 = vsel %vm951_vm3, %v1852_v9, %v1862_v20  ;;  %1601 = vmatprep.subr.bf16.mxu0 %v1600_v12 }
 0x11b   : >> { %v1608_v30 = vpack.c.bf16 %v1867_v15, %v1862_v20  ;;  %v961_v34 = vsel %vm951_vm3, %v1866_v29, %v1856_v21  ;;  %v963_v36 = vsel %vm951_vm3, %v1857_v19, %v1867_v15  ;;  %v946_v63 = vpop.permute.xlu0 %945 }
 0x11c   : >> { %v1602_v3 = vpack.c.bf16 %v961_v34, %v958_v31  ;;  %v1610_v7 = vpack.c.bf16 %v963_v36, %v960_v33  ;;  %v948_v10 = vpop.permute.xlu1 %947  ;;  %v1137_v33 = vld [vmem:[#allocation4 + $0x20] sm:$0xff] }
 0x11d   : >> { %1609 = vmatprep.subr.bf16.mxu1 %v1608_v30  ;;  %v965_v35 = vsel %vm951_vm3, %v946_v63, %v948_v10 }
 0x11e   : >> { %1603 = vmatpush1.bf16.msra.mxu0 %v1602_v3  ;;  %1611 = vmatpush1.bf16.msra.mxu1 %v1610_v7 }
 0x11f   : >> { %998 = vmatprep.subr.mxu0 %v965_v35  ;;  %v1870_v13 = vpop.permute.xlu0 %1869 }
 0x120   : >> { %v1872_v32 = vunpack.i.h.bf16 %v1870_v13  ;;  %v1871_v16 = vunpack.i.l.bf16 %v1870_v13  ;;  %v1875_v18 = vpop.permute.xlu1 %1874 }
 0x121   : >> { %v1877_v22 = vunpack.i.h.bf16 %v1875_v18  ;;  %v1876_v23 = vunpack.i.l.bf16 %v1875_v18 }
 0x122   : >> { %v1180_v37 = vsel %vm1178_vm4, %v1871_v16, %v1872_v32 }
 0x123   : >> { %v944_v38 = vpop.permute.xlu0 %943  ;;  %v1183_v39 = vsel %vm1178_vm4, %v1876_v23, %v1877_v22 }
 0x124   : >> { %v964_v40 = vsel %vm951_vm3, %v944_v38, %v946_v63  ;;  %v950_v41 = vpop.permute.xlu1 %949  ;;  %v1612_v42 = vpack.c.bf16 %v1183_v39, %v1180_v37 }
 0x125   : >> { %v966_v44 = vsel %vm951_vm3, %v948_v10, %v950_v41  ;;  %1069 = vmatprep.subr.mxu1 %v950_v41  ;;  %999 = vmatpush1.msra.mxu0 %v964_v40 }
 0x126   : >> { %1070 = vmatpush1.msra.mxu1 %v966_v44  ;;  %1613 = vmatprep.subr.bf16.mxu0 %v1612_v42 }
 0x127   : >> { %v1880_v45 = vpop.permute.xlu0 %1879  ;;  %1537 = vmatmul.mubr.msk.f32.vlgmr.msra.gmra.mrb[0].mxu0 %vm391_vm1, %v910_v43  ;;  %1538 = vmatmul.mubr.msk.f32.vlgmr.msra.gmra.mrb[0].mxu1 %vm391_vm1, %v910_v43 }
 0x128   : >> { %v1882_v46 = vunpack.i.h.bf16 %v1880_v45  ;;  %v1881_v47 = vunpack.i.l.bf16 %v1880_v45  ;;  %v1885_v48 = vpop.permute.xlu1 %1884  ;;  %1281 = vmatprep.mubr.f32.mxu0 %v2055_v27  ;;  %1352 = vmatprep.mubr.f32.mxu1 %v2055_v27 }
 0x129   : >> { %v1887_v49 = vunpack.i.h.bf16 %v1885_v48  ;;  %v1886_v50 = vunpack.i.l.bf16 %v1885_v48 }
 0x12a   : >> { %v1179_v51 = vsel %vm1178_vm4, %v1881_v47, %v1871_v16  ;;  %v1181_v52 = vsel %vm1178_vm4, %v1872_v32, %v1882_v46 }
 0x12b   : >> { %v1620_v53 = vpack.c.bf16 %v1887_v49, %v1882_v46  ;;  %v1182_v54 = vsel %vm1178_vm4, %v1886_v50, %v1876_v23  ;;  %v1184_v55 = vsel %vm1178_vm4, %v1877_v22, %v1887_v49  ;;  %v1890_v56 = vpop.permute.xlu0 %1889 }
 0x12c   : >> { %v1614_v57 = vpack.c.bf16 %v1182_v54, %v1179_v51  ;;  %v1622_v58 = vpack.c.bf16 %v1184_v55, %v1181_v52  ;;  %v1892_v59 = vunpack.i.h.bf16 %v1890_v56  ;;  %v1891_v60 = vunpack.i.l.bf16 %v1890_v56  ;;  %v1895_v61 = vpop.permute.xlu1 %1894 }
 0x12d   : >> { %v1897_v62 = vunpack.i.h.bf16 %v1895_v61  ;;  %v1896_v0 = vunpack.i.l.bf16 %v1895_v61  ;;  %1621 = vmatprep.subr.bf16.mxu1 %v1620_v53 }
 0x12e   : >> { %1615 = vmatpush1.bf16.msra.mxu0 %v1614_v57  ;;  %1623 = vmatpush1.bf16.msra.mxu1 %v1622_v58  ;;  %v1186_v27 = vsel %vm1178_vm4, %v1891_v60, %v1892_v59 }
 0x12f   : >> { %v1900_v2 = vpop.permute.xlu0 %1899  ;;  %v1189_v4 = vsel %vm1178_vm4, %v1896_v0, %v1897_v62 }
 0x130   : >> { %v1902_v5 = vunpack.i.h.bf16 %v1900_v2  ;;  %v1901_v1 = vunpack.i.l.bf16 %v1900_v2  ;;  %v1905_v6 = vpop.permute.xlu1 %1904  ;;  %v1616_v8 = vpack.c.bf16 %v1189_v4, %v1186_v27 }
 0x131   : >> { %v1907_v9 = vunpack.i.h.bf16 %v1905_v6  ;;  %v1906_v11 = vunpack.i.l.bf16 %v1905_v6 }
 0x132   : >> { %v1185_v14 = vsel %vm1178_vm4, %v1901_v1, %v1891_v60  ;;  %v1187_v19 = vsel %vm1178_vm4, %v1892_v59, %v1902_v5  ;;  %1617 = vmatprep.subr.bf16.mxu0 %v1616_v8 }
 0x133   : >> { %v1624_v21 = vpack.c.bf16 %v1907_v9, %v1902_v5  ;;  %v1188_v24 = vsel %vm1178_vm4, %v1906_v11, %v1896_v0  ;;  %v1190_v25 = vsel %vm1178_vm4, %v1897_v62, %v1907_v9  ;;  %v1173_v17 = vpop.permute.xlu0 %1172 }
 0x134   : >> { %v1618_v20 = vpack.c.bf16 %v1188_v24, %v1185_v14  ;;  %v1626_v26 = vpack.c.bf16 %v1190_v25, %v1187_v19  ;;  %v1175_v28 = vpop.permute.xlu1 %1174 }
 0x135   : >> { %1625 = vmatprep.subr.bf16.mxu1 %v1624_v21  ;;  %v1192_v12 = vsel %vm1178_vm4, %v1173_v17, %v1175_v28 }
 0x136   : >> { %1619 = vmatpush1.bf16.msra.mxu0 %v1618_v20  ;;  %1627 = vmatpush1.bf16.msra.mxu1 %v1626_v26 }
 0x137   : >> { %1225 = vmatprep.subr.mxu0 %v1192_v12  ;;  %v1171_v15 = vpop.permute.xlu0 %1170 }
 0x138   : >> { %v1191_v29 = vsel %vm1178_vm4, %v1171_v15, %v1173_v17  ;;  %v1177_v31 = vpop.permute.xlu1 %1176 }
 0x139   : >> { %v1193_v30 = vsel %vm1178_vm4, %v1175_v28, %v1177_v31  ;;  %1296 = vmatprep.subr.mxu1 %v1177_v31 }
 0x13a   : >> { %1226 = vmatpush1.msra.mxu0 %v1191_v29  ;;  %1297 = vmatpush1.msra.mxu1 %v1193_v30 }
 0x13b   : >> { %1539 = vmatmul.mubr.msk.f32.vlgmr.msra.gmra.mrb[0].mxu0 %vm391_vm1, %v1137_v33  ;;  %1540 = vmatmul.mubr.msk.f32.vlgmr.msra.gmra.mrb[0].mxu1 %vm391_vm1, %v1137_v33 }
 0x148   : >> { %v1367_v34 = vpop.permute.xlu0 %1366 }
 0x149   : >> { %v1377_v36 = vpop.permute.xlu1 %1376 }
 0x20e   : >> { %v1283_v63 = vpop.f32.mrb[0].mxu0  ;;  %v1354_v3 = vpop.f32.mrb[0].mxu1 }
 0x20f   : >> { %v1369_v7 = vmul.f32 %v1367_v34, %v1283_v63  ;;  %v1371_v10 = vmul.f32 %v1367_v34, %v1354_v3  ;;  %v1285_v35 = vpop.f32.mrb[1].mxu0  ;;  %v1356_v13 = vpop.f32.mrb[1].mxu1 }
 0x210   : >> { %v1370_v32 = vmul.f32 %v1367_v34, %v1285_v35  ;;  %v1372_v16 = vmul.f32 %v1367_v34, %v1356_v13  ;;  %263 = sbr.rel (!%p261_p5) target bundleno = 97 (0x61), region = 93 }
 0x211   : >> { %v1379_v18 = vadd.f32 %v1377_v36, %v1369_v7  ;;  %v1381_v22 = vadd.f32 %v1377_v36, %v1371_v10 }
 0x212   : >> { %v1380_v23 = vadd.f32 %v1377_v36, %v1370_v32  ;;  %v1382_v37 = vadd.f32 %v1377_v36, %v1372_v16 }
 0x213   : >> { %v1383_v38 = vmax.f32 %v1379_v18, 0.0  ;;  %v1385_v39 = vmax.f32 %v1381_v22, 0.0 }
 0x214   : >> { %v1384_v40 = vmax.f32 %v1380_v23, 0.0  ;;  %v1386_v41 = vmax.f32 %v1382_v37, 0.0 }
 0x215   : >> { %1393 = vst [vmem:[%s1392_s7] sm:$0xff] %v1383_v38  ;;  %1395 = vst [vmem:[%s1392_s7 + $0x10] sm:$0xff] %v1385_v39 }
 0x216   : >> { %1394 = vst [vmem:[%s1392_s7 + $0x8] sm:$0xff] %v1384_v40  ;;  %1397 = vst.msk [vmem:[%s1392_s7 + $0x18] sm:$0xff] %vm1396_vm5, %v1386_v41 }
 0x217 PF: > { %s18_s22 = sadd.s32 1, %s2042_s22   ;;  %s2570_s15 = smov %s2018_s16 }
 0x218   : > { %p15_p8 = scmp.ge.s32.totalorder %s18_s22, 28   ;;  %s2571_s16 = smov %s2022_s17 }
 0x219   : > { %s2572_s17 = smov %s2191_s13  ;;  %s2573_s18 = smov %s2034_s20 }
 0x21a   : > { %s2574_s19 = smov %s2038_s21  ;;  %s2575_s20 = smov %s2578_s23 }
 0x21b   : > { %s2576_s21 = smov %s2582_s27  ;;  %17 = sbr.rel (!%p15_p8) target bundleno = 6 (0x6), region = 104 }
 0x222   :  { %1430 = vsyncpa [#allocation3], 1 }
 0x223   :  { %1432 = vsyncpa [#allocation3 + $0x1], 1 }
 0x224   :  { %1433 = vsyncpa [#allocation5], 1 }

</bundles_post_ra>
